<compile_context>
chip_gen: v5e
topology: v5e:2x2
jax: 0.10.0
libtpu: 0.0.40
codegen_flags: <defaults>
</compile_context>

<pallas_src>
import functools

import jax
import jax.numpy as jnp
from jax import lax
from jax.experimental import pallas as pl
from jax.experimental.pallas import tpu as pltpu


def _round_up(v, m):
    return (v + m - 1) // m * m


_COMPILER_PARAMS = pltpu.CompilerParams(
    dimension_semantics=("parallel",),        # M tiles are independent -> megacore shard
    vmem_limit_bytes=32 * 1024 * 1024,        # explicit budget, <= physical on v5e/v6e/v7x
)


# ----------------------------- Pallas kernels ------------------------------

def _matmul_kernel(x_ref, w_ref, o_ref):
    """(TM, K) @ (K, Nc) -> (TM, Nc); bf16 operands, f32 MXU accumulation."""
    o_ref[...] = jnp.dot(x_ref[...], w_ref[...],
                         preferred_element_type=jnp.float32).astype(o_ref.dtype)


def _bias_concat_kernel(y_ref, s_ref, b_ref, o_ref):
    """o[:, :C] = y + bias ; o[:, C:] = skip  (fused bias-add + channel concat)."""
    c = y_ref.shape[1]
    o_ref[:, :c] = (y_ref[...] + b_ref[...]).astype(o_ref.dtype)
    o_ref[:, c:] = s_ref[...].astype(o_ref.dtype)


# --------------------------- pallas_call wrappers ---------------------------

def matmul_tiled(x2, w2, *, tm=512):
    """x2:(M, K) @ w2:(K, Nc) -> (M, Nc) f32.  Tiled over M, weight resident."""
    M, K = x2.shape
    Nc = w2.shape[1]
    tm = min(tm, _round_up(M, 8))
    mp = _round_up(M, tm)
    if mp != M:
        x2 = jnp.pad(x2, ((0, mp - M), (0, 0)))
    out = pl.pallas_call(
        _matmul_kernel,
        grid=(mp // tm,),
        in_specs=[pl.BlockSpec((tm, K), lambda i: (i, 0)),
                  pl.BlockSpec((K, Nc), lambda i: (0, 0))],   # resident across the grid
        out_specs=pl.BlockSpec((tm, Nc), lambda i: (i, 0)),
        out_shape=jax.ShapeDtypeStruct((mp, Nc), jnp.float32),
        compiler_params=_COMPILER_PARAMS,
    )(x2.astype(jnp.bfloat16), w2.astype(jnp.bfloat16))
    return out[:M]


def bias_concat_tiled(y2, s2, b, *, tm=512):
    """out[:, :C1] = y2 + b ; out[:, C1:] = s2.  Tiled over rows (M)."""
    M, c1 = y2.shape
    c2 = s2.shape[1]
    tm = min(tm, _round_up(M, 8))
    mp = _round_up(M, tm)
    if mp != M:
        y2 = jnp.pad(y2, ((0, mp - M), (0, 0)))
        s2 = jnp.pad(s2, ((0, mp - M), (0, 0)))
    out = pl.pallas_call(
        _bias_concat_kernel,
        grid=(mp // tm,),
        in_specs=[pl.BlockSpec((tm, c1), lambda i: (i, 0)),
                  pl.BlockSpec((tm, c2), lambda i: (i, 0)),
                  pl.BlockSpec((1, c1), lambda i: (0, 0))],   # bias resident
        out_specs=pl.BlockSpec((tm, c1 + c2), lambda i: (i, 0)),
        out_shape=jax.ShapeDtypeStruct((mp, c1 + c2), jnp.float32),
        compiler_params=_COMPILER_PARAMS,
    )(y2.astype(jnp.float32), s2.astype(jnp.float32),
      b.reshape(1, c1).astype(jnp.float32))
    return out[:M]


# ------------------------------ forward pass --------------------------------

def transition_up_forward(params, x_nchw, skip_nchw, tm=512):
    """_TransitionUp.forward: convTrans(x) -> center_crop(skip.H, skip.W) -> cat([out, skip], 1).

    params["w"]: (Cin, Cout, 3, 3)  -- PyTorch ConvTranspose2d weight layout
    params["b"]: (Cout,)
    x_nchw:      (N, Cin, H, W)     NCHW (PyTorch convention)
    skip_nchw:   (N, Cs, Hs, Ws)
    returns:     (N, Cout + Cs, Hs, Ws)
    """
    w, b = params["w"], params["b"]
    x = jnp.transpose(x_nchw, (0, 2, 3, 1))        # NHWC: channels -> lane dim
    skip = jnp.transpose(skip_nchw, (0, 2, 3, 1))
    N, H, W, Cin = x.shape
    Cout = w.shape[1]
    Hs, Ws, Cs = skip.shape[1], skip.shape[2], skip.shape[3]

    # 1) All 9 tap contributions of every input pixel in ONE fat matmul (MXU, Pallas).
    #    z[n,h,w,kh,kw,co] = sum_ci x[n,h,w,ci] * w[ci,co,kh,kw]
    w2 = jnp.transpose(w, (0, 2, 3, 1)).reshape(Cin, 9 * Cout)
    z2 = matmul_tiled(x.reshape(N * H * W, Cin), w2, tm=tm)
    z = z2.reshape(N, H, W, 3, 3, Cout)

    # 2) Zero-free sub-pixel assembly of the stride-2 transposed-conv output:
    #    out[2h+kh, 2w+kw] += z[h, w, kh, kw]   (layout glue only, no scatter).
    def rpad(t, a):    # place rows h -> h+a inside an (H+1)-row canvas
        return jnp.pad(t, ((0, 0), (a, 1 - a), (0, 0), (0, 0)))

    def cpad(t, bb):   # place cols w -> w+bb inside a (W+1)-col canvas
        return jnp.pad(t, ((0, 0), (0, 0), (bb, 1 - bb), (0, 0)))

    y_ee = sum(rpad(cpad(z[:, :, :, 2 * a, 2 * bb, :], bb), a)
               for a in (0, 1) for bb in (0, 1))                     # even rows / even cols
    y_eo = sum(rpad(z[:, :, :, 2 * a, 1, :], a) for a in (0, 1))     # even rows / odd cols
    y_oe = sum(cpad(z[:, :, :, 1, 2 * bb, :], bb) for bb in (0, 1))  # odd rows / even cols
    y_oo = z[:, :, :, 1, 1, :]                                       # odd rows / odd cols

    def interleave(even, odd, axis):
        """Interleave along `axis`: even has n+1 entries, odd has n -> 2n+1."""
        n = odd.shape[axis]
        pad_cfg = [(0, 0)] * odd.ndim
        pad_cfg[axis] = (0, 1)
        odd_p = jnp.pad(odd, pad_cfg)
        st = jnp.stack([even, odd_p], axis=axis + 1)
        new_shape = list(even.shape)
        new_shape[axis] = 2 * (n + 1)
        return lax.slice_in_dim(st.reshape(new_shape), 0, 2 * n + 1, axis=axis)

    rows_even = interleave(y_ee, y_eo, axis=2)          # (N, H+1, 2W+1, Cout)
    rows_odd = interleave(y_oe, y_oo, axis=2)           # (N, H,   2W+1, Cout)
    y_full = interleave(rows_even, rows_odd, axis=1)    # (N, 2H+1, 2W+1, Cout)

    # 3) center_crop(out, skip.H, skip.W)
    off_h = (2 * H + 1 - Hs) // 2
    off_w = (2 * W + 1 - Ws) // 2
    y_crop = y_full[:, off_h:off_h + Hs, off_w:off_w + Ws, :]

    # 4) bias add + torch.cat([out, skip], 1), fused in one tiled Pallas pass.
    out2 = bias_concat_tiled(y_crop.reshape(N * Hs * Ws, Cout),
                             skip.reshape(N * Hs * Ws, Cs), b, tm=tm)
    out = out2.reshape(N, Hs, Ws, Cout + Cs)
    return jnp.transpose(out, (0, 3, 1, 2))             # back to NCHW


# ----------------------------------- main -----------------------------------

if __name__ == "__main__":
    key = jax.random.PRNGKey(0)
    kw_, kb_, kx_, ks_ = jax.random.split(key, 4)

    # _TransitionUp(num_input_features=32, num_output_features=16)
    N, Cin, H, W = 2, 32, 16, 16
    Cout = 16
    Cs, Hs, Ws = 16, 2 * H, 2 * W          # skip comes from before the 2x downsample

    w = jax.random.normal(kw_, (Cin, Cout, 3, 3), jnp.float32) / jnp.sqrt(9.0 * Cin)
    b = 0.01 * jax.random.normal(kb_, (Cout,), jnp.float32)
    x = jax.random.normal(kx_, (N, Cin, H, W), jnp.float32)
    skip = jax.random.normal(ks_, (N, Cs, Hs, Ws), jnp.float32)

    params = {"w": w, "b": b}
    fwd = jax.jit(functools.partial(transition_up_forward, tm=256))  # tm=256 -> multi-tile grid
    out = fwd(params, x, skip)
    jax.block_until_ready(out)
    assert out.shape == (N, Cout + Cs, Hs, Ws), out.shape
    assert bool(jnp.all(jnp.isfinite(out)))

    # Reference: ConvTranspose2d == conv over the 2x-dilated input with the spatially
    # flipped kernel, followed by the same center_crop + concat.
    w_flip_oihw = jnp.transpose(jnp.flip(w, (2, 3)), (1, 0, 2, 3))
    ref = lax.conv_general_dilated(
        x, w_flip_oihw, window_strides=(1, 1), padding=((2, 2), (2, 2)),
        lhs_dilation=(2, 2), rhs_dilation=(1, 1),
        dimension_numbers=("NCHW", "OIHW", "NCHW"))
    ref = ref + b[None, :, None, None]
    oh = (ref.shape[2] - Hs) // 2
    ow = (ref.shape[3] - Ws) // 2
    ref = jnp.concatenate([ref[:, :, oh:oh + Hs, ow:ow + Ws], skip], axis=1)
    err = float(jnp.max(jnp.abs(out - ref)))
    assert err < 5e-2, f"max abs error vs reference too large: {err}"

    print("KERNEL_OK")
</pallas_src>

<mosaic_0001>
module attributes {stable_mosaic.version = 11 : i64} {
  func.func @_matmul_kernel(%arg0: i32, %arg1: memref<256x32xbf16, #tpu.memory_space<vmem>>, %arg2: memref<32x144xbf16, #tpu.memory_space<vmem>>, %arg3: memref<256x144xf32, #tpu.memory_space<vmem>>) attributes {dimension_semantics = [#tpu.dimension_semantics<parallel>], iteration_bounds = array<i64: 2>, scalar_prefetch = 0 : i64, scratch_operands = 0 : i64, tpu.core_type = #tpu.core_type<tc>, window_params = [{transform_indices = @transform_0, window_bounds = array<i64: 256, 32>}, {pipeline_mode = #tpu.pipeline_mode<synchronous>, transform_indices = @transform_1, window_bounds = array<i64: 32, 144>}, {transform_indices = @transform_2, window_bounds = array<i64: 256, 144>}]} {
    %c0 = arith.constant 0 : index
    %c0_0 = arith.constant 0 : index
    %0 = vector.load %arg1[%c0, %c0_0] : memref<256x32xbf16, #tpu.memory_space<vmem>>, vector<256x32xbf16>
    %c0_1 = arith.constant 0 : index
    %c0_2 = arith.constant 0 : index
    %1 = vector.load %arg2[%c0_1, %c0_2] : memref<32x144xbf16, #tpu.memory_space<vmem>>, vector<32x144xbf16>
    %cst = arith.constant dense<0.000000e+00> : vector<256x144xf32>
    %2 = tpu.matmul %0, %1, %cst {dimension_numbers = #tpu.dot_dimension_numbers<[1], [0], [0], [1], [0, 0, 1, 1], [], []>} : vector<256x32xbf16>, vector<32x144xbf16>, vector<256x144xf32> -> vector<256x144xf32>
    %c0_3 = arith.constant 0 : index
    %c0_4 = arith.constant 0 : index
    %3 = vector.load %arg3[%c0_3, %c0_4] : memref<256x144xf32, #tpu.memory_space<vmem>>, vector<256x144xf32>
    tpu.vector_store %arg3[%c0_3, %c0_4], %2 {strides = array<i32>} : memref<256x144xf32, #tpu.memory_space<vmem>>, vector<256x144xf32>,
    return
  }
  func.func @transform_0(%arg0: i32) -> (i32, i32) {
    %c0_i32 = arith.constant 0 : i32
    %c0_i32_0 = arith.constant 0 : i32
    return %arg0, %c0_i32 : i32, i32
  }
  func.func @transform_1(%arg0: i32) -> (i32, i32) {
    %c0_i32 = arith.constant 0 : i32
    %c0_i32_0 = arith.constant 0 : i32
    %c0_i32_1 = arith.constant 0 : i32
    return %c0_i32, %c0_i32_0 : i32, i32
  }
  func.func @transform_2(%arg0: i32) -> (i32, i32) {
    %c0_i32 = arith.constant 0 : i32
    %c0_i32_0 = arith.constant 0 : i32
    return %arg0, %c0_i32 : i32, i32
  }
}

module attributes {stable_mosaic.version = 11 : i64} {
  func.func @_bias_concat_kernel(%arg0: i32, %arg1: memref<256x16xf32, #tpu.memory_space<vmem>>, %arg2: memref<256x16xf32, #tpu.memory_space<vmem>>, %arg3: memref<1x16xf32, #tpu.memory_space<vmem>>, %arg4: memref<256x32xf32, #tpu.memory_space<vmem>>) attributes {dimension_semantics = [#tpu.dimension_semantics<parallel>], iteration_bounds = array<i64: 8>, scalar_prefetch = 0 : i64, scratch_operands = 0 : i64, tpu.core_type = #tpu.core_type<tc>, window_params = [{transform_indices = @transform_0, window_bounds = array<i64: 256, 16>}, {transform_indices = @transform_1, window_bounds = array<i64: 256, 16>}, {pipeline_mode = #tpu.pipeline_mode<synchronous>, transform_indices = @transform_2, window_bounds = array<i64: 1, 16>}, {transform_indices = @transform_3, window_bounds = array<i64: 256, 32>}]} {
    %c0 = arith.constant 0 : index
    %c0_0 = arith.constant 0 : index
    %0 = vector.load %arg1[%c0, %c0_0] : memref<256x16xf32, #tpu.memory_space<vmem>>, vector<256x16xf32>
    %c0_1 = arith.constant 0 : index
    %c0_2 = arith.constant 0 : index
    %1 = vector.load %arg3[%c0_1, %c0_2] : memref<1x16xf32, #tpu.memory_space<vmem>>, vector<1x16xf32>
    %2 = vector.broadcast %1 : vector<1x16xf32> to vector<256x16xf32>
    %3 = arith.addf %0, %2 : vector<256x16xf32>
    %c0_3 = arith.constant 0 : index
    %c0_4 = arith.constant 0 : index
    %4 = vector.load %arg4[%c0_3, %c0_4] : memref<256x32xf32, #tpu.memory_space<vmem>>, vector<256x16xf32>
    tpu.vector_store %arg4[%c0_3, %c0_4], %3 {strides = array<i32>} : memref<256x32xf32, #tpu.memory_space<vmem>>, vector<256x16xf32>,
    %c0_5 = arith.constant 0 : index
    %c0_6 = arith.constant 0 : index
    %5 = vector.load %arg2[%c0_5, %c0_6] : memref<256x16xf32, #tpu.memory_space<vmem>>, vector<256x16xf32>
    %c0_7 = arith.constant 0 : index
    %c16 = arith.constant 16 : index
    %6 = vector.load %arg4[%c0_7, %c16] : memref<256x32xf32, #tpu.memory_space<vmem>>, vector<256x16xf32>
    tpu.vector_store %arg4[%c0_7, %c16], %5 {strides = array<i32>} : memref<256x32xf32, #tpu.memory_space<vmem>>, vector<256x16xf32>,
    return
  }
  func.func @transform_0(%arg0: i32) -> (i32, i32) {
    %c0_i32 = arith.constant 0 : i32
    %c0_i32_0 = arith.constant 0 : i32
    return %arg0, %c0_i32 : i32, i32
  }
  func.func @transform_1(%arg0: i32) -> (i32, i32) {
    %c0_i32 = arith.constant 0 : i32
    %c0_i32_0 = arith.constant 0 : i32
    return %arg0, %c0_i32 : i32, i32
  }
  func.func @transform_2(%arg0: i32) -> (i32, i32) {
    %c0_i32 = arith.constant 0 : i32
    %c0_i32_0 = arith.constant 0 : i32
    %c0_i32_1 = arith.constant 0 : i32
    return %c0_i32, %c0_i32_0 : i32, i32
  }
  func.func @transform_3(%arg0: i32) -> (i32, i32) {
    %c0_i32 = arith.constant 0 : i32
    %c0_i32_0 = arith.constant 0 : i32
    return %arg0, %c0_i32 : i32, i32
  }
}

</mosaic_0001>

<bundles_post_ra>
// kernel: transition_up_forward.2
= control target key start
LH: loop header
LB: loop body
LE: loop exit
PB: predicated region body
PF: predicated region fallthrough
CT: control target
= control target key end

     0   :  { %s816_s9 = smov 0   ;;  %s1009_s0 = inlined_call_operand.vmem [shape: bf16[512,32], index: 0, kind: input, shape index: {}]   ;;  %s1010_s1 = inlined_call_operand.vmem [shape: bf16[32,144], index: 1, kind: input, shape index: {}]   ;;  %s1011_s2 = inlined_call_operand.vmem [shape: f32[512,144], index: 2, kind: output, shape index: {}]  }
   0x1 LB: > { %s636_s10 = sadd.s32 4294967295, %s799_s9   ;;  %p640_p0 = scmp.ge.s32.totalorder %s799_s9, 1  ;;  %s799_s9 = sphi %s816_s9, %s12_s9  }
   0x2   : > { %p113_p1 = scmp.lt.s32.totalorder %s799_s9, 3 }
   0x4   : > { %p114_p2 = pnand %p640_p0, %p113_p1 }
   0x5   : > { %s641_s27 = sshll.u32 (!%p114_p2), %s636_s10, 5 }
   0x6   : > { %117 = sbr.rel (%p114_p2) target bundleno = 275 (0x113), region = 28  ;;  %p137_p3 = scmp.lt.s32.totalorder (!%p114_p2), %s641_s27, 63 }
   0xb   : > { %v720_v0 = vld [vmem:[%s1010_s1 + $0x10] sm:$0xf]  ;;  %v780_v1 = vld [vmem:[%s1010_s1 + $0x14] sm:$0xf0]  ;;  %v779_v2 = vld [vmem:[%s1010_s1 + $0x14] sm:$0xf] }
   0xc   : > { %v721_v3 = vor.u32 %v780_v1, %v720_v0  ;;  %v722_v4 = vld [vmem:[%s1010_s1 + $0x18] sm:$0xf0]  ;;  %v712_v5 = vld [vmem:[%s1010_s1] sm:$0xf]  ;;  %v778_v6 = vld [vmem:[%s1010_s1 + $0x4] sm:$0xf0] }
   0xd   : > { %v725_v7 = vor.u32 %v779_v2, %v722_v4  ;;  %v777_v8 = vld [vmem:[%s1010_s1 + $0x4] sm:$0xf]  ;;  %v714_v9 = vld [vmem:[%s1010_s1 + $0x8] sm:$0xf0]  ;;  %v713_v10 = vor.u32 %v778_v6, %v712_v5  ;;  %s1013_s27 = smov (!%p137_p3, %s641_s27), 63  ;;  %vm286_vm0 = vcmask 261120  }
   0xe   : > { %341 = vmatpush.bf16.msra.mxu0 %v721_v3  ;;  %781 = vmatpush.bf16.msra.mxu2 %v721_v3  ;;  %v717_v11 = vor.u32 %v777_v8, %v714_v9  ;;  %s642_s28 = sshll.u32 %s1013_s27, 2  ;;  %s760_s4 = sshll.u32 %s1013_s27, 4  ;;  %vm514_vm1 = vcmask 130048  }
   0xf   : > { %430 = vmatpush.bf16.msra.mxu1 %v725_v7  ;;  %783 = vmatpush.bf16.msra.mxu3 %v725_v7  ;;  %s854_s3 = scalar_lea.vmem %s1009_s0, %s642_s28  ;;  %s908_s7 = scalar_lea.vmem %s1011_s2, %s760_s4 }
  0x10   : > { %v761_v12 = vld [vmem:[%s854_s3] sm:$0xff]  ;;  %v762_v14 = vld [vmem:[%s854_s3 + $0x8] sm:$0xff]  ;;  %v763_v16 = vld [vmem:[%s854_s3 + $0x10] sm:$0xff] }
  0x11   : > { %v769_v13 = vld [vmem:[%s854_s3 + $0x40] sm:$0xff]  ;;  %v770_v15 = vld [vmem:[%s854_s3 + $0x48] sm:$0xff]  ;;  %v771_v17 = vld [vmem:[%s854_s3 + $0x50] sm:$0xff] }
  0x12   : > { %342 = vmatpush.bf16.msra.mxu0 %v713_v10  ;;  %782 = vmatpush.bf16.msra.mxu2 %v713_v10  ;;  %v764_v18 = vld [vmem:[%s854_s3 + $0x18] sm:$0xff]  ;;  %v765_v20 = vld [vmem:[%s854_s3 + $0x20] sm:$0xff]  ;;  %v766_v22 = vld [vmem:[%s854_s3 + $0x28] sm:$0xff] }
  0x13   : > { %431 = vmatpush.bf16.msra.mxu1 %v717_v11  ;;  %784 = vmatpush.bf16.msra.mxu3 %v717_v11  ;;  %v772_v19 = vld [vmem:[%s854_s3 + $0x58] sm:$0xff]  ;;  %v773_v21 = vld [vmem:[%s854_s3 + $0x60] sm:$0xff]  ;;  %v774_v23 = vld [vmem:[%s854_s3 + $0x68] sm:$0xff] }
  0x14   : > { %v767_v24 = vld [vmem:[%s854_s3 + $0x30] sm:$0xff]  ;;  %v768_v26 = vld [vmem:[%s854_s3 + $0x38] sm:$0xff] }
  0x15   : > { %726 = vmatmul.msk.bf16.vlgmr.msra.gmra.mxu0 %vm286_vm0, %v761_v12  ;;  %734 = vmatmul.msk.bf16.vlgmr.msra.gmra.mxu2 %vm286_vm0, %v769_v13  ;;  %v775_v25 = vld [vmem:[%s854_s3 + $0x70] sm:$0xff]  ;;  %v776_v27 = vld [vmem:[%s854_s3 + $0x78] sm:$0xff] }
  0x16   : > { %742 = vmatmul.msk.bf16.vlgmr.msra.gmra.mxu1 %vm286_vm0, %v761_v12  ;;  %750 = vmatmul.msk.bf16.vlgmr.msra.gmra.mxu3 %vm286_vm0, %v769_v13 }
  0x25   : > { %727 = vmatmul.msk.bf16.gmra.mxu0 %vm286_vm0, %v762_v14  ;;  %735 = vmatmul.msk.bf16.gmra.mxu2 %vm286_vm0, %v770_v15 }
  0x26   : > { %743 = vmatmul.msk.bf16.gmra.mxu1 %vm286_vm0, %v762_v14  ;;  %751 = vmatmul.msk.bf16.gmra.mxu3 %vm286_vm0, %v770_v15 }
  0x35   : > { %728 = vmatmul.msk.bf16.gmra.mxu0 %vm286_vm0, %v763_v16  ;;  %736 = vmatmul.msk.bf16.gmra.mxu2 %vm286_vm0, %v771_v17 }
  0x36   : > { %744 = vmatmul.msk.bf16.gmra.mxu1 %vm286_vm0, %v763_v16  ;;  %752 = vmatmul.msk.bf16.gmra.mxu3 %vm286_vm0, %v771_v17 }
  0x45   : > { %729 = vmatmul.msk.bf16.gmra.mxu0 %vm286_vm0, %v764_v18  ;;  %737 = vmatmul.msk.bf16.gmra.mxu2 %vm286_vm0, %v772_v19 }
  0x46   : > { %745 = vmatmul.msk.bf16.gmra.mxu1 %vm286_vm0, %v764_v18  ;;  %753 = vmatmul.msk.bf16.gmra.mxu3 %vm286_vm0, %v772_v19 }
  0x55   : > { %730 = vmatmul.msk.bf16.gmra.mxu0 %vm286_vm0, %v765_v20  ;;  %738 = vmatmul.msk.bf16.gmra.mxu2 %vm286_vm0, %v773_v21 }
  0x56   : > { %746 = vmatmul.msk.bf16.gmra.mxu1 %vm286_vm0, %v765_v20  ;;  %754 = vmatmul.msk.bf16.gmra.mxu3 %vm286_vm0, %v773_v21 }
  0x65   : > { %731 = vmatmul.msk.bf16.gmra.mxu0 %vm286_vm0, %v766_v22  ;;  %739 = vmatmul.msk.bf16.gmra.mxu2 %vm286_vm0, %v774_v23 }
  0x66   : > { %747 = vmatmul.msk.bf16.gmra.mxu1 %vm286_vm0, %v766_v22  ;;  %755 = vmatmul.msk.bf16.gmra.mxu3 %vm286_vm0, %v774_v23 }
  0x75   : > { %732 = vmatmul.msk.bf16.gmra.mxu0 %vm286_vm0, %v767_v24  ;;  %740 = vmatmul.msk.bf16.gmra.mxu2 %vm286_vm0, %v775_v25 }
  0x76   : > { %748 = vmatmul.msk.bf16.gmra.mxu1 %vm286_vm0, %v767_v24  ;;  %756 = vmatmul.msk.bf16.gmra.mxu3 %vm286_vm0, %v775_v25 }
  0x85   : > { %733 = vmatmul.msk.bf16.gmra.mxu0 %vm286_vm0, %v768_v26  ;;  %741 = vmatmul.msk.bf16.gmra.mxu2 %vm286_vm0, %v776_v27 }
  0x86   : > { %749 = vmatmul.msk.bf16.gmra.mxu1 %vm286_vm0, %v768_v26  ;;  %757 = vmatmul.msk.bf16.gmra.mxu3 %vm286_vm0, %v776_v27 }
  0x92   : > { %v344_v28 = vpop.f32.mrf.mxu0 }
  0x93   : > { %513 = vst [vmem:[%s908_s7] sm:$0xff] %v344_v28  ;;  %v433_v29 = vpop.f32.mrf.mxu1 }
  0x94   : > { %515 = vst.msk [vmem:[%s908_s7 + $0x8] sm:$0xff] %vm514_vm1, %v433_v29 }
  0x98   : > { %v384_v30 = vpop.f32.mrf.mxu2 }
  0x99   : > { %546 = vst [vmem:[%s908_s7 + $0x100] sm:$0xff] %v384_v30  ;;  %v473_v31 = vpop.f32.mrf.mxu3 }
  0x9a   : > { %547 = vst.msk [vmem:[%s908_s7 + $0x108] sm:$0xff] %vm514_vm1, %v473_v31  ;;  %v346_v32 = vpop.f32.mrf.mxu0 }
  0x9b   : > { %516 = vst [vmem:[%s908_s7 + $0x10] sm:$0xff] %v346_v32  ;;  %v435_v33 = vpop.f32.mrf.mxu1 }
  0x9c   : > { %517 = vst.msk [vmem:[%s908_s7 + $0x18] sm:$0xff] %vm514_vm1, %v435_v33 }
  0xa0   : > { %v386_v34 = vpop.f32.mrf.mxu2 }
  0xa1   : > { %548 = vst [vmem:[%s908_s7 + $0x110] sm:$0xff] %v386_v34  ;;  %v475_v35 = vpop.f32.mrf.mxu3 }
  0xa2   : > { %549 = vst.msk [vmem:[%s908_s7 + $0x118] sm:$0xff] %vm514_vm1, %v475_v35  ;;  %v349_v36 = vpop.f32.mrf.mxu0 }
  0xa3   : > { %518 = vst [vmem:[%s908_s7 + $0x20] sm:$0xff] %v349_v36  ;;  %v438_v37 = vpop.f32.mrf.mxu1 }
  0xa4   : > { %519 = vst.msk [vmem:[%s908_s7 + $0x28] sm:$0xff] %vm514_vm1, %v438_v37 }
  0xa8   : > { %v389_v38 = vpop.f32.mrf.mxu2 }
  0xa9   : > { %550 = vst [vmem:[%s908_s7 + $0x120] sm:$0xff] %v389_v38  ;;  %v478_v39 = vpop.f32.mrf.mxu3 }
  0xaa   : > { %551 = vst.msk [vmem:[%s908_s7 + $0x128] sm:$0xff] %vm514_vm1, %v478_v39  ;;  %v351_v40 = vpop.f32.mrf.mxu0 }
  0xab   : > { %520 = vst [vmem:[%s908_s7 + $0x30] sm:$0xff] %v351_v40  ;;  %v440_v41 = vpop.f32.mrf.mxu1 }
  0xac   : > { %521 = vst.msk [vmem:[%s908_s7 + $0x38] sm:$0xff] %vm514_vm1, %v440_v41 }
  0xb0   : > { %v391_v42 = vpop.f32.mrf.mxu2 }
  0xb1   : > { %552 = vst [vmem:[%s908_s7 + $0x130] sm:$0xff] %v391_v42  ;;  %v480_v43 = vpop.f32.mrf.mxu3 }
  0xb2   : > { %553 = vst.msk [vmem:[%s908_s7 + $0x138] sm:$0xff] %vm514_vm1, %v480_v43  ;;  %v354_v44 = vpop.f32.mrf.mxu0 }
  0xb3   : > { %522 = vst [vmem:[%s908_s7 + $0x40] sm:$0xff] %v354_v44  ;;  %v443_v45 = vpop.f32.mrf.mxu1 }
  0xb4   : > { %523 = vst.msk [vmem:[%s908_s7 + $0x48] sm:$0xff] %vm514_vm1, %v443_v45 }
  0xb8   : > { %v394_v46 = vpop.f32.mrf.mxu2 }
  0xb9   : > { %554 = vst [vmem:[%s908_s7 + $0x140] sm:$0xff] %v394_v46  ;;  %v483_v47 = vpop.f32.mrf.mxu3 }
  0xba   : > { %555 = vst.msk [vmem:[%s908_s7 + $0x148] sm:$0xff] %vm514_vm1, %v483_v47  ;;  %v356_v48 = vpop.f32.mrf.mxu0 }
  0xbb   : > { %524 = vst [vmem:[%s908_s7 + $0x50] sm:$0xff] %v356_v48  ;;  %v445_v49 = vpop.f32.mrf.mxu1 }
  0xbc   : > { %525 = vst.msk [vmem:[%s908_s7 + $0x58] sm:$0xff] %vm514_vm1, %v445_v49 }
  0xc0   : > { %v396_v50 = vpop.f32.mrf.mxu2 }
  0xc1   : > { %556 = vst [vmem:[%s908_s7 + $0x150] sm:$0xff] %v396_v50  ;;  %v485_v51 = vpop.f32.mrf.mxu3 }
  0xc2   : > { %557 = vst.msk [vmem:[%s908_s7 + $0x158] sm:$0xff] %vm514_vm1, %v485_v51  ;;  %v359_v52 = vpop.f32.mrf.mxu0 }
  0xc3   : > { %526 = vst [vmem:[%s908_s7 + $0x60] sm:$0xff] %v359_v52  ;;  %v448_v53 = vpop.f32.mrf.mxu1 }
  0xc4   : > { %527 = vst.msk [vmem:[%s908_s7 + $0x68] sm:$0xff] %vm514_vm1, %v448_v53 }
  0xc8   : > { %v399_v54 = vpop.f32.mrf.mxu2 }
  0xc9   : > { %558 = vst [vmem:[%s908_s7 + $0x160] sm:$0xff] %v399_v54  ;;  %v488_v55 = vpop.f32.mrf.mxu3 }
  0xca   : > { %559 = vst.msk [vmem:[%s908_s7 + $0x168] sm:$0xff] %vm514_vm1, %v488_v55  ;;  %v361_v56 = vpop.f32.mrf.mxu0 }
  0xcb   : > { %528 = vst [vmem:[%s908_s7 + $0x70] sm:$0xff] %v361_v56  ;;  %v450_v57 = vpop.f32.mrf.mxu1 }
  0xcc   : > { %529 = vst.msk [vmem:[%s908_s7 + $0x78] sm:$0xff] %vm514_vm1, %v450_v57 }
  0xd0   : > { %v401_v58 = vpop.f32.mrf.mxu2 }
  0xd1   : > { %560 = vst [vmem:[%s908_s7 + $0x170] sm:$0xff] %v401_v58  ;;  %v490_v59 = vpop.f32.mrf.mxu3 }
  0xd2   : > { %561 = vst.msk [vmem:[%s908_s7 + $0x178] sm:$0xff] %vm514_vm1, %v490_v59  ;;  %v364_v60 = vpop.f32.mrf.mxu0 }
  0xd3   : > { %530 = vst [vmem:[%s908_s7 + $0x80] sm:$0xff] %v364_v60  ;;  %v453_v61 = vpop.f32.mrf.mxu1 }
  0xd4   : > { %531 = vst.msk [vmem:[%s908_s7 + $0x88] sm:$0xff] %vm514_vm1, %v453_v61 }
  0xd8   : > { %v404_v62 = vpop.f32.mrf.mxu2 }
  0xd9   : > { %562 = vst [vmem:[%s908_s7 + $0x180] sm:$0xff] %v404_v62  ;;  %v493_v63 = vpop.f32.mrf.mxu3 }
  0xda   : > { %563 = vst.msk [vmem:[%s908_s7 + $0x188] sm:$0xff] %vm514_vm1, %v493_v63  ;;  %v366_v0 = vpop.f32.mrf.mxu0 }
  0xdb   : > { %532 = vst [vmem:[%s908_s7 + $0x90] sm:$0xff] %v366_v0  ;;  %v455_v1 = vpop.f32.mrf.mxu1 }
  0xdc   : > { %533 = vst.msk [vmem:[%s908_s7 + $0x98] sm:$0xff] %vm514_vm1, %v455_v1 }
  0xe0   : > { %v406_v2 = vpop.f32.mrf.mxu2 }
  0xe1   : > { %564 = vst [vmem:[%s908_s7 + $0x190] sm:$0xff] %v406_v2  ;;  %v495_v3 = vpop.f32.mrf.mxu3 }
  0xe2   : > { %565 = vst.msk [vmem:[%s908_s7 + $0x198] sm:$0xff] %vm514_vm1, %v495_v3  ;;  %v369_v4 = vpop.f32.mrf.mxu0 }
  0xe3   : > { %534 = vst [vmem:[%s908_s7 + $0xa0] sm:$0xff] %v369_v4  ;;  %v458_v5 = vpop.f32.mrf.mxu1 }
  0xe4   : > { %535 = vst.msk [vmem:[%s908_s7 + $0xa8] sm:$0xff] %vm514_vm1, %v458_v5 }
  0xe8   : > { %v409_v6 = vpop.f32.mrf.mxu2 }
  0xe9   : > { %566 = vst [vmem:[%s908_s7 + $0x1a0] sm:$0xff] %v409_v6  ;;  %v498_v7 = vpop.f32.mrf.mxu3 }
  0xea   : > { %567 = vst.msk [vmem:[%s908_s7 + $0x1a8] sm:$0xff] %vm514_vm1, %v498_v7  ;;  %v371_v8 = vpop.f32.mrf.mxu0 }
  0xeb   : > { %536 = vst [vmem:[%s908_s7 + $0xb0] sm:$0xff] %v371_v8  ;;  %v460_v9 = vpop.f32.mrf.mxu1 }
  0xec   : > { %537 = vst.msk [vmem:[%s908_s7 + $0xb8] sm:$0xff] %vm514_vm1, %v460_v9 }
  0xf0   : > { %v411_v10 = vpop.f32.mrf.mxu2 }
  0xf1   : > { %568 = vst [vmem:[%s908_s7 + $0x1b0] sm:$0xff] %v411_v10  ;;  %v500_v11 = vpop.f32.mrf.mxu3 }
  0xf2   : > { %569 = vst.msk [vmem:[%s908_s7 + $0x1b8] sm:$0xff] %vm514_vm1, %v500_v11  ;;  %v374_v12 = vpop.f32.mrf.mxu0 }
  0xf3   : > { %538 = vst [vmem:[%s908_s7 + $0xc0] sm:$0xff] %v374_v12  ;;  %v463_v13 = vpop.f32.mrf.mxu1 }
  0xf4   : > { %539 = vst.msk [vmem:[%s908_s7 + $0xc8] sm:$0xff] %vm514_vm1, %v463_v13 }
  0xf8   : > { %v414_v14 = vpop.f32.mrf.mxu2 }
  0xf9   : > { %570 = vst [vmem:[%s908_s7 + $0x1c0] sm:$0xff] %v414_v14  ;;  %v503_v15 = vpop.f32.mrf.mxu3 }
  0xfa   : > { %571 = vst.msk [vmem:[%s908_s7 + $0x1c8] sm:$0xff] %vm514_vm1, %v503_v15  ;;  %v376_v16 = vpop.f32.mrf.mxu0 }
  0xfb   : > { %540 = vst [vmem:[%s908_s7 + $0xd0] sm:$0xff] %v376_v16  ;;  %v465_v17 = vpop.f32.mrf.mxu1 }
  0xfc   : > { %541 = vst.msk [vmem:[%s908_s7 + $0xd8] sm:$0xff] %vm514_vm1, %v465_v17 }
 0x100   : > { %v416_v18 = vpop.f32.mrf.mxu2 }
 0x101   : > { %572 = vst [vmem:[%s908_s7 + $0x1d0] sm:$0xff] %v416_v18  ;;  %v505_v19 = vpop.f32.mrf.mxu3 }
 0x102   : > { %573 = vst.msk [vmem:[%s908_s7 + $0x1d8] sm:$0xff] %vm514_vm1, %v505_v19  ;;  %v379_v20 = vpop.f32.mrf.mxu0 }
 0x103   : > { %542 = vst [vmem:[%s908_s7 + $0xe0] sm:$0xff] %v379_v20  ;;  %v468_v21 = vpop.f32.mrf.mxu1 }
 0x104   : > { %543 = vst.msk [vmem:[%s908_s7 + $0xe8] sm:$0xff] %vm514_vm1, %v468_v21 }
 0x108   : > { %v419_v22 = vpop.f32.mrf.mxu2 }
 0x109   : > { %574 = vst [vmem:[%s908_s7 + $0x1e0] sm:$0xff] %v419_v22  ;;  %v508_v23 = vpop.f32.mrf.mxu3 }
 0x10a   : > { %575 = vst.msk [vmem:[%s908_s7 + $0x1e8] sm:$0xff] %vm514_vm1, %v508_v23  ;;  %v381_v24 = vpop.f32.mrf.mxu0 }
 0x10b   : > { %544 = vst [vmem:[%s908_s7 + $0xf0] sm:$0xff] %v381_v24  ;;  %v470_v25 = vpop.f32.mrf.mxu1 }
 0x10c   : > { %545 = vst.msk [vmem:[%s908_s7 + $0xf8] sm:$0xff] %vm514_vm1, %v470_v25 }
 0x110   : > { %v421_v26 = vpop.f32.mrf.mxu2 }
 0x111   : > { %576 = vst [vmem:[%s908_s7 + $0x1f0] sm:$0xff] %v421_v26  ;;  %v510_v27 = vpop.f32.mrf.mxu3 }
 0x112   : > { %577 = vst.msk [vmem:[%s908_s7 + $0x1f8] sm:$0xff] %vm514_vm1, %v510_v27 }
 0x113 PF: > { %s12_s9 = sadd.s32 1, %s799_s9  }
 0x114   : > { %p9_p4 = scmp.ge.s32.totalorder %s12_s9, 4  }
 0x116   :  { %11 = sbr.rel (!%p9_p4) target bundleno = 1 (0x1), region = 58 }

// kernel: transition_up_forward.3
= control target key start
LH: loop header
LB: loop body
LE: loop exit
PB: predicated region body
PF: predicated region fallthrough
CT: control target
= control target key end

     0   :  { %s610_s12 = smov 0   ;;  %s902_s0 = inlined_call_operand.vmem [shape: f32[2048,16], index: 0, kind: input, shape index: {}]   ;;  %s903_s1 = inlined_call_operand.vmem [shape: f32[2048,16], index: 1, kind: input, shape index: {}]   ;;  %s904_s2 = inlined_call_operand.vmem [shape: f32[1,16], index: 2, kind: input, shape index: {}]   ;;  %s905_s3 = inlined_call_operand.vmem [shape: f32[2048,32], index: 3, kind: output, shape index: {}]  }
   0x1 LB: > { %s558_s13 = sadd.s32 4294967295, %s587_s12   ;;  %p562_p0 = scmp.ge.s32.totalorder %s587_s12, 1  ;;  %s587_s12 = sphi %s610_s12, %s13_s12  }
   0x2   : > { %p149_p1 = scmp.lt.s32.totalorder %s587_s12, 9 }
   0x4   : > { %p150_p2 = pnand %p562_p0, %p149_p1 }
   0x5   : > { %s563_s14 = sshll.u32 (!%p150_p2), %s558_s13, 5  ;;  %s589_s19 = smov (!%p150_p2), 16  }
   0x6   : > { %153 = sbr.rel (%p150_p2) target bundleno = 212 (0xd4), region = 32  ;;  %p179_p3 = scmp.lt.s32.totalorder (!%p150_p2), %s563_s14, 255 }
   0xb   : > { %s907_s14 = smov (!%p179_p3, %s563_s14), 255  ;;  %v689_v30 = vld [vmem:[%s904_s2] ss:$0 sm:$0xff]  ;;  %vm264_vm0 = vcmask 130048   ;;  %vm457_vm1 = vcmask 261248  }
   0xc   : > { %s618_s15 = sshll.u32 %s907_s14, 3 }
   0xd   : > { %s624_s18 = scalar_lea.vmem %s903_s1, %s618_s15  ;;  %s695_s24 = scalar_lea.vmem %s902_s0, %s618_s15 }
   0xe   : > { %v299_v0 = vld [vmem:[%s624_s18 + $0x10] sm:$0xff]  ;;  %v297_v1 = vld [vmem:[%s624_s18] sm:$0xff]  ;;  %v300_v3 = vld [vmem:[%s624_s18 + $0x18] sm:$0xff]  ;;  %s703_s27 = scalar_lea.vmem %s905_s3, %s618_s15 }
   0xf   : > { %365 = vrot.lane.b32.xlu1 %v299_v0, %s589_s19  ;;  %361 = vrot.lane.b32.xlu0 %v297_v1, %s589_s19  ;;  %v301_v2 = vld [vmem:[%s624_s18 + $0x20] sm:$0xff]  ;;  %v298_v4 = vld [vmem:[%s624_s18 + $0x8] sm:$0xff] }
  0x10   : > { %369 = vrot.lane.b32.xlu2 %v301_v2, %s589_s19  ;;  %v302_v5 = vld [vmem:[%s624_s18 + $0x28] sm:$0xff]  ;;  %v304_v6 = vld [vmem:[%s624_s18 + $0x38] sm:$0xff]  ;;  %v303_v7 = vld [vmem:[%s624_s18 + $0x30] sm:$0xff] }
  0x11   : > { %v305_v8 = vld [vmem:[%s624_s18 + $0x40] sm:$0xff]  ;;  %v307_v9 = vld [vmem:[%s624_s18 + $0x50] sm:$0xff]  ;;  %v306_v10 = vld [vmem:[%s624_s18 + $0x48] sm:$0xff] }
  0x12   : > { %v308_v11 = vld [vmem:[%s624_s18 + $0x58] sm:$0xff]  ;;  %v310_v12 = vld [vmem:[%s624_s18 + $0x68] sm:$0xff]  ;;  %v309_v13 = vld [vmem:[%s624_s18 + $0x60] sm:$0xff] }
  0x13   : > { %v311_v14 = vld [vmem:[%s624_s18 + $0x70] sm:$0xff]  ;;  %v313_v15 = vld [vmem:[%s624_s18 + $0x80] sm:$0xff]  ;;  %v312_v16 = vld [vmem:[%s624_s18 + $0x78] sm:$0xff] }
  0x14   : > { %v314_v17 = vld [vmem:[%s624_s18 + $0x88] sm:$0xff]  ;;  %v316_v18 = vld [vmem:[%s624_s18 + $0x98] sm:$0xff]  ;;  %v315_v19 = vld [vmem:[%s624_s18 + $0x90] sm:$0xff] }
  0x15   : > { %v317_v20 = vld [vmem:[%s624_s18 + $0xa0] sm:$0xff]  ;;  %v319_v21 = vld [vmem:[%s624_s18 + $0xb0] sm:$0xff]  ;;  %v318_v22 = vld [vmem:[%s624_s18 + $0xa8] sm:$0xff] }
  0x16   : > { %v320_v23 = vld [vmem:[%s624_s18 + $0xb8] sm:$0xff]  ;;  %v322_v24 = vld [vmem:[%s624_s18 + $0xc8] sm:$0xff]  ;;  %v321_v25 = vld [vmem:[%s624_s18 + $0xc0] sm:$0xff] }
  0x17   : > { %367 = vrot.lane.b32.xlu1 %v300_v3, %s589_s19  ;;  %363 = vrot.lane.b32.xlu0 %v298_v4, %s589_s19  ;;  %v323_v26 = vld [vmem:[%s624_s18 + $0xd0] sm:$0xff]  ;;  %v325_v27 = vld [vmem:[%s624_s18 + $0xe0] sm:$0xff] }
  0x18   : > { %371 = vrot.lane.b32.xlu2 %v302_v5, %s589_s19  ;;  %v324_v28 = vld [vmem:[%s624_s18 + $0xd8] sm:$0xff]  ;;  %v326_v29 = vld [vmem:[%s624_s18 + $0xe8] sm:$0xff]  ;;  %v327_v32 = vld [vmem:[%s624_s18 + $0xf0] sm:$0xff] }
  0x19   : > { %v328_v31 = vld [vmem:[%s624_s18 + $0xf8] sm:$0xff]  ;;  %v198_v33 = vld [vmem:[%s695_s24 + $0x10] sm:$0xff]  ;;  %v196_v34 = vld [vmem:[%s695_s24] sm:$0xff] }
  0x1a   : > { %v234_v35 = vadd.f32 %v689_v30, %v198_v33  ;;  %v232_v36 = vadd.f32 %v689_v30, %v196_v34  ;;  %v200_v37 = vld [vmem:[%s695_s24 + $0x20] sm:$0xff]  ;;  %v199_v39 = vld [vmem:[%s695_s24 + $0x18] sm:$0xff]  ;;  %v197_v40 = vld [vmem:[%s695_s24 + $0x8] sm:$0xff] }
  0x1b   : > { %v236_v38 = vadd.f32 %v689_v30, %v200_v37  ;;  %v235_v41 = vadd.f32 %v689_v30, %v199_v39  ;;  %v233_v42 = vadd.f32 %v689_v30, %v197_v40  ;;  %v201_v43 = vld [vmem:[%s695_s24 + $0x28] sm:$0xff]  ;;  %v203_v46 = vld [vmem:[%s695_s24 + $0x38] sm:$0xff]  ;;  %v202_v47 = vld [vmem:[%s695_s24 + $0x30] sm:$0xff] }
  0x1c   : > { %267 = vst.msk [vmem:[%s703_s27 + $0x10] sm:$0xff] %vm264_vm0, %v234_v35  ;;  %v237_v45 = vadd.f32 %v689_v30, %v201_v43  ;;  %v239_v48 = vadd.f32 %v689_v30, %v203_v46  ;;  %v238_v49 = vadd.f32 %v689_v30, %v202_v47  ;;  %v204_v50 = vld [vmem:[%s695_s24 + $0x40] sm:$0xff]  ;;  %v206_v53 = vld [vmem:[%s695_s24 + $0x50] sm:$0xff]  ;;  %v205_v54 = vld [vmem:[%s695_s24 + $0x48] sm:$0xff] }
  0x1d   : > { %265 = vst.msk [vmem:[%s703_s27] sm:$0xff] %vm264_vm0, %v232_v36  ;;  %v240_v52 = vadd.f32 %v689_v30, %v204_v50  ;;  %v242_v55 = vadd.f32 %v689_v30, %v206_v53  ;;  %v241_v56 = vadd.f32 %v689_v30, %v205_v54  ;;  %v207_v57 = vld [vmem:[%s695_s24 + $0x58] sm:$0xff]  ;;  %v209_v60 = vld [vmem:[%s695_s24 + $0x68] sm:$0xff]  ;;  %v208_v61 = vld [vmem:[%s695_s24 + $0x60] sm:$0xff] }
  0x1e   : > { %269 = vst.msk [vmem:[%s703_s27 + $0x20] sm:$0xff] %vm264_vm0, %v236_v38  ;;  %v243_v59 = vadd.f32 %v689_v30, %v207_v57  ;;  %v245_v62 = vadd.f32 %v689_v30, %v209_v60  ;;  %v244_v1 = vadd.f32 %v689_v30, %v208_v61  ;;  %v210_v2 = vld [vmem:[%s695_s24 + $0x70] sm:$0xff]  ;;  %v212_v5 = vld [vmem:[%s695_s24 + $0x80] sm:$0xff]  ;;  %v221_v33 = vld [vmem:[%s695_s24 + $0xc8] sm:$0xff] }
  0x1f   : > { %375 = vrot.lane.b32.xlu1 %v304_v6, %s589_s19  ;;  %373 = vrot.lane.b32.xlu0 %v303_v7, %s589_s19  ;;  %268 = vst.msk [vmem:[%s703_s27 + $0x18] sm:$0xff] %vm264_vm0, %v235_v41  ;;  %v246_v4 = vadd.f32 %v689_v30, %v210_v2  ;;  %v211_v6 = vld [vmem:[%s695_s24 + $0x78] sm:$0xff]  ;;  %v248_v7 = vadd.f32 %v689_v30, %v212_v5 }
  0x20   : > { %377 = vrot.lane.b32.xlu2 %v305_v8, %s589_s19  ;;  %266 = vst.msk [vmem:[%s703_s27 + $0x8] sm:$0xff] %vm264_vm0, %v233_v42  ;;  %v220_v34 = vld [vmem:[%s695_s24 + $0xc0] sm:$0xff]  ;;  %v257_v35 = vadd.f32 %v689_v30, %v221_v33  ;;  %v222_v39 = vld [vmem:[%s695_s24 + $0xd0] sm:$0xff] }
  0x21   : > { %270 = vst.msk [vmem:[%s703_s27 + $0x28] sm:$0xff] %vm264_vm0, %v237_v45  ;;  %v256_v38 = vadd.f32 %v689_v30, %v220_v34  ;;  %v258_v41 = vadd.f32 %v689_v30, %v222_v39  ;;  %v224_v42 = vld [vmem:[%s695_s24 + $0xe0] sm:$0xff]  ;;  %v223_v43 = vld [vmem:[%s695_s24 + $0xd8] sm:$0xff] }
  0x22   : > { %272 = vst.msk [vmem:[%s703_s27 + $0x38] sm:$0xff] %vm264_vm0, %v239_v48  ;;  %v259_v47 = vadd.f32 %v689_v30, %v223_v43  ;;  %v225_v48 = vld [vmem:[%s695_s24 + $0xe8] sm:$0xff] }
  0x23   : > { %271 = vst.msk [vmem:[%s703_s27 + $0x30] sm:$0xff] %vm264_vm0, %v238_v49  ;;  %v261_v50 = vadd.f32 %v689_v30, %v225_v48 }
  0x24   : > { %273 = vst.msk [vmem:[%s703_s27 + $0x40] sm:$0xff] %vm264_vm0, %v240_v52  ;;  %v226_v52 = vld [vmem:[%s695_s24 + $0xf0] sm:$0xff] }
  0x25   : > { %275 = vst.msk [vmem:[%s703_s27 + $0x50] sm:$0xff] %vm264_vm0, %v242_v55 }
  0x26   : > { %274 = vst.msk [vmem:[%s703_s27 + $0x48] sm:$0xff] %vm264_vm0, %v241_v56  ;;  %v262_v56 = vadd.f32 %v689_v30, %v226_v52 }
  0x27   : > { %381 = vrot.lane.b32.xlu1 %v307_v9, %s589_s19  ;;  %379 = vrot.lane.b32.xlu0 %v306_v10, %s589_s19  ;;  %276 = vst.msk [vmem:[%s703_s27 + $0x58] sm:$0xff] %vm264_vm0, %v243_v59  ;;  %v247_v10 = vadd.f32 %v689_v30, %v211_v6 }
  0x28   : > { %383 = vrot.lane.b32.xlu2 %v308_v11, %s589_s19  ;;  %278 = vst.msk [vmem:[%s703_s27 + $0x68] sm:$0xff] %vm264_vm0, %v245_v62  ;;  %v213_v11 = vld [vmem:[%s695_s24 + $0x88] sm:$0xff] }
  0x29   : > { %277 = vst.msk [vmem:[%s703_s27 + $0x60] sm:$0xff] %vm264_vm0, %v244_v1 }
  0x2a   : > { %279 = vst.msk [vmem:[%s703_s27 + $0x70] sm:$0xff] %vm264_vm0, %v246_v4 }
  0x2b   : > { %281 = vst.msk [vmem:[%s703_s27 + $0x80] sm:$0xff] %vm264_vm0, %v248_v7 }
  0x2c   : > { %280 = vst.msk [vmem:[%s703_s27 + $0x78] sm:$0xff] %vm264_vm0, %v247_v10 }
  0x2d   : > { %290 = vst.msk [vmem:[%s703_s27 + $0xc8] sm:$0xff] %vm264_vm0, %v257_v35 }
  0x2e   : > { %289 = vst.msk [vmem:[%s703_s27 + $0xc0] sm:$0xff] %vm264_vm0, %v256_v38 }
  0x2f   : > { %387 = vrot.lane.b32.xlu1 %v310_v12, %s589_s19  ;;  %385 = vrot.lane.b32.xlu0 %v309_v13, %s589_s19  ;;  %v249_v13 = vadd.f32 %v689_v30, %v213_v11  ;;  %291 = vst.msk [vmem:[%s703_s27 + $0xd0] sm:$0xff] %vm264_vm0, %v258_v41 }
  0x30   : > { %389 = vrot.lane.b32.xlu2 %v311_v14, %s589_s19  ;;  %v215_v14 = vld [vmem:[%s695_s24 + $0x98] sm:$0xff]  ;;  %292 = vst.msk [vmem:[%s703_s27 + $0xd8] sm:$0xff] %vm264_vm0, %v259_v47 }
  0x31   : > { %282 = vst.msk [vmem:[%s703_s27 + $0x88] sm:$0xff] %vm264_vm0, %v249_v13 }
  0x32   : > { %294 = vst.msk [vmem:[%s703_s27 + $0xe8] sm:$0xff] %vm264_vm0, %v261_v50 }
  0x33   : > { %295 = vst.msk [vmem:[%s703_s27 + $0xf0] sm:$0xff] %vm264_vm0, %v262_v56 }
  0x37   : > { %393 = vrot.lane.b32.xlu1 %v313_v15, %s589_s19  ;;  %391 = vrot.lane.b32.xlu0 %v312_v16, %s589_s19  ;;  %v214_v15 = vld [vmem:[%s695_s24 + $0x90] sm:$0xff]  ;;  %v251_v16 = vadd.f32 %v689_v30, %v215_v14 }
  0x38   : > { %395 = vrot.lane.b32.xlu2 %v314_v17, %s589_s19 }
  0x39   : > { %284 = vst.msk [vmem:[%s703_s27 + $0x98] sm:$0xff] %vm264_vm0, %v251_v16 }
  0x3f   : > { %399 = vrot.lane.b32.xlu1 %v316_v18, %s589_s19  ;;  %397 = vrot.lane.b32.xlu0 %v315_v19, %s589_s19  ;;  %v250_v19 = vadd.f32 %v689_v30, %v214_v15 }
  0x40   : > { %401 = vrot.lane.b32.xlu2 %v317_v20, %s589_s19  ;;  %v216_v20 = vld [vmem:[%s695_s24 + $0xa0] sm:$0xff] }
  0x41   : > { %283 = vst.msk [vmem:[%s703_s27 + $0x90] sm:$0xff] %vm264_vm0, %v250_v19 }
  0x47   : > { %405 = vrot.lane.b32.xlu1 %v319_v21, %s589_s19  ;;  %403 = vrot.lane.b32.xlu0 %v318_v22, %s589_s19  ;;  %v252_v22 = vadd.f32 %v689_v30, %v216_v20 }
  0x48   : > { %407 = vrot.lane.b32.xlu2 %v320_v23, %s589_s19  ;;  %v218_v23 = vld [vmem:[%s695_s24 + $0xb0] sm:$0xff] }
  0x49   : > { %285 = vst.msk [vmem:[%s703_s27 + $0xa0] sm:$0xff] %vm264_vm0, %v252_v22 }
  0x4f   : > { %411 = vrot.lane.b32.xlu1 %v322_v24, %s589_s19  ;;  %409 = vrot.lane.b32.xlu0 %v321_v25, %s589_s19  ;;  %v217_v24 = vld [vmem:[%s695_s24 + $0xa8] sm:$0xff]  ;;  %v254_v25 = vadd.f32 %v689_v30, %v218_v23 }
  0x50   : > { %413 = vrot.lane.b32.xlu2 %v323_v26, %s589_s19 }
  0x51   : > { %287 = vst.msk [vmem:[%s703_s27 + $0xb0] sm:$0xff] %vm264_vm0, %v254_v25 }
  0x57   : > { %417 = vrot.lane.b32.xlu1 %v325_v27, %s589_s19  ;;  %415 = vrot.lane.b32.xlu0 %v324_v28, %s589_s19  ;;  %v253_v28 = vadd.f32 %v689_v30, %v217_v24 }
  0x58   : > { %419 = vrot.lane.b32.xlu2 %v326_v29, %s589_s19  ;;  %v219_v29 = vld [vmem:[%s695_s24 + $0xb8] sm:$0xff] }
  0x59   : > { %286 = vst.msk [vmem:[%s703_s27 + $0xa8] sm:$0xff] %vm264_vm0, %v253_v28 }
  0x5f   : > { %423 = vrot.lane.b32.xlu1 %v328_v31, %s589_s19  ;;  %421 = vrot.lane.b32.xlu0 %v327_v32, %s589_s19  ;;  %v255_v32 = vadd.f32 %v689_v30, %v219_v29 }
  0x61   : > { %288 = vst.msk [vmem:[%s703_s27 + $0xb8] sm:$0xff] %vm264_vm0, %v255_v32 }
  0x6a   : > { %v370_v44 = vpop.permute.xlu2 %369 }
  0x6b   : > { %462 = vst.msk [vmem:[%s703_s27 + $0x20] sm:$0xff] %vm457_vm1, %v370_v44  ;;  %v260_v44 = vadd.f32 %v689_v30, %v224_v42 }
  0x6d   : > { %293 = vst.msk [vmem:[%s703_s27 + $0xe0] sm:$0xff] %vm264_vm0, %v260_v44 }
  0x72   : > { %v372_v51 = vpop.permute.xlu2 %371 }
  0x73   : > { %463 = vst.msk [vmem:[%s703_s27 + $0x28] sm:$0xff] %vm457_vm1, %v372_v51  ;;  %v227_v51 = vld [vmem:[%s695_s24 + $0xf8] sm:$0xff] }
  0x74   : > { %v263_v53 = vadd.f32 %v689_v30, %v227_v51 }
  0x76   : > { %296 = vst.msk [vmem:[%s703_s27 + $0xf8] sm:$0xff] %vm264_vm0, %v263_v53 }
  0x7a   : > { %v378_v58 = vpop.permute.xlu2 %377 }
  0x7b   : > { %466 = vst.msk [vmem:[%s703_s27 + $0x40] sm:$0xff] %vm457_vm1, %v378_v58 }
  0x81   : > { %v366_v63 = vpop.permute.xlu1 %365  ;;  %v362_v0 = vpop.permute.xlu0 %361 }
  0x82   : > { %460 = vst.msk [vmem:[%s703_s27 + $0x10] sm:$0xff] %vm457_vm1, %v366_v63  ;;  %v384_v3 = vpop.permute.xlu2 %383 }
  0x83   : > { %458 = vst.msk [vmem:[%s703_s27] sm:$0xff] %vm457_vm1, %v362_v0 }
  0x84   : > { %469 = vst.msk [vmem:[%s703_s27 + $0x58] sm:$0xff] %vm457_vm1, %v384_v3 }
  0x89   : > { %v368_v8 = vpop.permute.xlu1 %367  ;;  %v364_v9 = vpop.permute.xlu0 %363 }
  0x8a   : > { %461 = vst.msk [vmem:[%s703_s27 + $0x18] sm:$0xff] %vm457_vm1, %v368_v8  ;;  %v390_v12 = vpop.permute.xlu2 %389 }
  0x8b   : > { %459 = vst.msk [vmem:[%s703_s27 + $0x8] sm:$0xff] %vm457_vm1, %v364_v9 }
  0x8c   : > { %472 = vst.msk [vmem:[%s703_s27 + $0x70] sm:$0xff] %vm457_vm1, %v390_v12 }
  0x91   : > { %v376_v17 = vpop.permute.xlu1 %375  ;;  %v374_v18 = vpop.permute.xlu0 %373 }
  0x92   : > { %465 = vst.msk [vmem:[%s703_s27 + $0x38] sm:$0xff] %vm457_vm1, %v376_v17  ;;  %v396_v21 = vpop.permute.xlu2 %395 }
  0x93   : > { %464 = vst.msk [vmem:[%s703_s27 + $0x30] sm:$0xff] %vm457_vm1, %v374_v18 }
  0x94   : > { %475 = vst.msk [vmem:[%s703_s27 + $0x88] sm:$0xff] %vm457_vm1, %v396_v21 }
  0x99   : > { %v382_v26 = vpop.permute.xlu1 %381  ;;  %v380_v27 = vpop.permute.xlu0 %379 }
  0x9a   : > { %468 = vst.msk [vmem:[%s703_s27 + $0x50] sm:$0xff] %vm457_vm1, %v382_v26  ;;  %v402_v31 = vpop.permute.xlu2 %401 }
  0x9b   : > { %467 = vst.msk [vmem:[%s703_s27 + $0x48] sm:$0xff] %vm457_vm1, %v380_v27 }
  0x9c   : > { %478 = vst.msk [vmem:[%s703_s27 + $0xa0] sm:$0xff] %vm457_vm1, %v402_v31 }
  0xa1   : > { %v388_v36 = vpop.permute.xlu1 %387  ;;  %v386_v37 = vpop.permute.xlu0 %385 }
  0xa2   : > { %471 = vst.msk [vmem:[%s703_s27 + $0x68] sm:$0xff] %vm457_vm1, %v388_v36  ;;  %v408_v40 = vpop.permute.xlu2 %407 }
  0xa3   : > { %470 = vst.msk [vmem:[%s703_s27 + $0x60] sm:$0xff] %vm457_vm1, %v386_v37 }
  0xa4   : > { %481 = vst.msk [vmem:[%s703_s27 + $0xb8] sm:$0xff] %vm457_vm1, %v408_v40 }
  0xa9   : > { %v394_v45 = vpop.permute.xlu1 %393  ;;  %v392_v46 = vpop.permute.xlu0 %391 }
  0xaa   : > { %474 = vst.msk [vmem:[%s703_s27 + $0x80] sm:$0xff] %vm457_vm1, %v394_v45  ;;  %v414_v49 = vpop.permute.xlu2 %413 }
  0xab   : > { %473 = vst.msk [vmem:[%s703_s27 + $0x78] sm:$0xff] %vm457_vm1, %v392_v46 }
  0xac   : > { %484 = vst.msk [vmem:[%s703_s27 + $0xd0] sm:$0xff] %vm457_vm1, %v414_v49 }
  0xb1   : > { %v400_v54 = vpop.permute.xlu1 %399  ;;  %v398_v55 = vpop.permute.xlu0 %397 }
  0xb2   : > { %477 = vst.msk [vmem:[%s703_s27 + $0x98] sm:$0xff] %vm457_vm1, %v400_v54  ;;  %v420_v57 = vpop.permute.xlu2 %419 }
  0xb3   : > { %476 = vst.msk [vmem:[%s703_s27 + $0x90] sm:$0xff] %vm457_vm1, %v398_v55 }
  0xb4   : > { %487 = vst.msk [vmem:[%s703_s27 + $0xe8] sm:$0xff] %vm457_vm1, %v420_v57 }
  0xb9   : > { %v406_v58 = vpop.permute.xlu1 %405  ;;  %v404_v59 = vpop.permute.xlu0 %403 }
  0xba   : > { %480 = vst.msk [vmem:[%s703_s27 + $0xb0] sm:$0xff] %vm457_vm1, %v406_v58 }
  0xbb   : > { %479 = vst.msk [vmem:[%s703_s27 + $0xa8] sm:$0xff] %vm457_vm1, %v404_v59 }
  0xc1   : > { %v412_v30 = vpop.permute.xlu1 %411  ;;  %v410_v60 = vpop.permute.xlu0 %409 }
  0xc2   : > { %483 = vst.msk [vmem:[%s703_s27 + $0xc8] sm:$0xff] %vm457_vm1, %v412_v30 }
  0xc3   : > { %482 = vst.msk [vmem:[%s703_s27 + $0xc0] sm:$0xff] %vm457_vm1, %v410_v60 }
  0xc9   : > { %v418_v61 = vpop.permute.xlu1 %417  ;;  %v416_v62 = vpop.permute.xlu0 %415 }
  0xca   : > { %486 = vst.msk [vmem:[%s703_s27 + $0xe0] sm:$0xff] %vm457_vm1, %v418_v61 }
  0xcb   : > { %485 = vst.msk [vmem:[%s703_s27 + $0xd8] sm:$0xff] %vm457_vm1, %v416_v62 }
  0xd1   : > { %v424_v63 = vpop.permute.xlu1 %423  ;;  %v422_v0 = vpop.permute.xlu0 %421 }
  0xd2   : > { %489 = vst.msk [vmem:[%s703_s27 + $0xf8] sm:$0xff] %vm457_vm1, %v424_v63 }
  0xd3   : > { %488 = vst.msk [vmem:[%s703_s27 + $0xf0] sm:$0xff] %vm457_vm1, %v422_v0 }
  0xd4 PF: > { %s13_s12 = sadd.s32 1, %s587_s12  }
  0xd5   : > { %p10_p4 = scmp.ge.s32.totalorder %s13_s12, 10  }
  0xd7   :  { %12 = sbr.rel (!%p10_p4) target bundleno = 1 (0x1), region = 65 }

</bundles_post_ra>
